<compile_context>
chip_gen: v5e
topology: v5e:2x2
jax: 0.10.0
libtpu: 0.0.40
codegen_flags: <defaults>
</compile_context>

<pallas_src>
import jax
import jax.numpy as jnp
from jax import lax
from jax.experimental import pallas as pl
from jax.experimental.pallas import tpu as pltpu

EPS = 1e-5            # RevIN eps
_SPLIT_MIN_B = 16     # emit >=2 grid steps (megacore) only when batch is at least this


def _rlinear_kernel(x_ref, wbd_ref, be_ref, abe_ref, rm_ref, em_ref, eaw_ref, einvaw_ref,
                    o_ref):
    # x_ref: (TB, L*D) lane-dense view of (TB, L, D); column index = l*D + d.
    x = x_ref[...].astype(jnp.float32)                                   # (TB, LD)
    rm = rm_ref[...]                                                     # (LD, D) 1/L block-eye

    # ---- RevIN 'norm': per-(batch, channel) stats over L, via MXU reductions ----
    mean = jnp.dot(x, rm, preferred_element_type=jnp.float32)            # (TB, D)
    mean_e = jnp.dot(mean, em_ref[...], preferred_element_type=jnp.float32)  # (TB, LD)
    xc = x - mean_e
    var = jnp.dot(xc * xc, rm, preferred_element_type=jnp.float32)       # (TB, D), biased
    var_eps = var + EPS
    stdev = jnp.sqrt(var_eps)                                            # (TB, D)
    inv_std = lax.rsqrt(var_eps)                                         # (TB, D)

    # affine_weight folded into the expansion matrices (built in the wrapper):
    #   eaw    : (D, LD) with aw[d] on the block-diagonal   -> nscale_e = aw/std, expanded
    #   einvaw : (D, LD) with 1/(aw+eps^2) on the diagonal  -> dscale_e = std/(aw+eps^2)
    nscale_e = jnp.dot(inv_std, eaw_ref[...], preferred_element_type=jnp.float32)  # (TB, LD)
    dscale_e = jnp.dot(stdev, einvaw_ref[...], preferred_element_type=jnp.float32)  # (TB, LD)

    abe = abe_ref[...]                                                   # (1, LD) tiled bias
    xn = xc * nscale_e + abe                                             # normalized x

    # dropout: identity (eval / inference mode)
    # TODO(synk): training-mode stochastic dropout not implemented (eval semantics).

    # ---- Linear(seq_len -> pred_len) over the channel dim: one block-diagonal matmul ----
    y = jnp.dot(xn, wbd_ref[...], preferred_element_type=jnp.float32) + be_ref[...]

    # ---- RevIN 'denorm': ((y - ab) / (aw + eps^2)) * stdev + mean ----
    out = (y - abe) * dscale_e + mean_e
    o_ref[...] = out.astype(o_ref.dtype)


def _pick_block_batch(B, cap):
    """Largest sensible batch tile: TB == B for tiny batches (block == full dim is
    layout-legal), otherwise a multiple of 8 giving >= 2 grid steps (v7x megacore)."""
    if B < _SPLIT_MIN_B:
        return B
    cap8 = max(8, (min(cap, B) // 8) * 8)
    tb = ((pl.cdiv(B, 2) + 7) // 8) * 8
    return min(tb, cap8)


def rlinear_forward(x, lin_w, lin_b, aff_w, aff_b, *, block_batch=1024):
    """x: (B, L, D); lin_w: (P, S); lin_b: (P,); aff_w/aff_b: (D,). Requires S == P == D."""
    B, L, D = x.shape
    P, S = lin_w.shape
    assert S == D and P == D, "reference PyTorch code requires seq_len == pred_len == channel"
    LD = L * D
    out_dtype = x.dtype

    # ---- one-time constant operands (tiny; built outside the kernel) ----
    f32 = jnp.float32
    lin_w32 = lin_w.astype(f32)
    w_bd = jnp.kron(jnp.eye(L, dtype=f32), lin_w32.T)                    # (LD, LD) block-diag W^T
    b_e = jnp.tile(lin_b.astype(f32), L).reshape(1, LD)                  # tiled Linear bias
    ab_e = jnp.tile(aff_b.astype(f32), L).reshape(1, LD)                 # tiled affine bias
    eye_d = jnp.eye(D, dtype=f32)
    r_mean = jnp.tile(eye_d, (L, 1)) * (1.0 / L)                         # (LD, D) mean reducer
    e_plain = jnp.tile(eye_d, (1, L))                                    # (D, LD) expander
    e_aw = aff_w.astype(f32)[:, None] * e_plain                          # expander * affine_weight
    e_invaw = (1.0 / (aff_w.astype(f32) + EPS * EPS))[:, None] * e_plain  # expander / (aw+eps^2)

    x_flat = x.reshape(B, LD)                                            # free, contiguous view

    TB = _pick_block_batch(B, block_batch)
    n_steps = pl.cdiv(B, TB)

    itemsize_in = jnp.dtype(x.dtype).itemsize
    itemsize_out = jnp.dtype(out_dtype).itemsize
    cost = pl.CostEstimate(
        flops=int(2 * B * LD * LD + 4 * B * LD * D + 6 * B * D * LD + 8 * B * LD),
        transcendentals=int(2 * B * D),
        bytes_accessed=int(B * LD * (itemsize_in + itemsize_out)
                           + 4 * (LD * LD + LD * D + 3 * D * LD + 2 * LD)),
    )

    out_flat = pl.pallas_call(
        _rlinear_kernel,
        out_shape=jax.ShapeDtypeStruct((B, LD), out_dtype),
        grid=(n_steps,),
        in_specs=[
            pl.BlockSpec((TB, LD), lambda b: (b, 0)),    # x (lane-dense)
            pl.BlockSpec((LD, LD), lambda b: (0, 0)),    # block-diagonal Linear weight
            pl.BlockSpec((1, LD), lambda b: (0, 0)),     # tiled Linear bias
            pl.BlockSpec((1, LD), lambda b: (0, 0)),     # tiled RevIN affine_bias
            pl.BlockSpec((LD, D), lambda b: (0, 0)),     # mean-reduction matrix
            pl.BlockSpec((D, LD), lambda b: (0, 0)),     # plain expansion matrix
            pl.BlockSpec((D, LD), lambda b: (0, 0)),     # expansion * affine_weight
            pl.BlockSpec((D, LD), lambda b: (0, 0)),     # expansion / (affine_weight + eps^2)
        ],
        out_specs=pl.BlockSpec((TB, LD), lambda b: (b, 0)),
        compiler_params=pltpu.CompilerParams(
            dimension_semantics=("parallel",),
            vmem_limit_bytes=32 * 1024 * 1024,
        ),
        cost_estimate=cost,
    )(x_flat, w_bd, b_e, ab_e, r_mean, e_plain, e_aw, e_invaw)

    return out_flat.reshape(B, L, P)


def rlinear_reference(x, lin_w, lin_b, aff_w, aff_b):
    """Pure-JAX reference mirroring the PyTorch forward exactly."""
    x = x.astype(jnp.float32)
    mean = jnp.mean(x, axis=1, keepdims=True)
    var = jnp.var(x, axis=1, keepdims=True)                 # unbiased=False
    stdev = jnp.sqrt(var + EPS)
    xn = (x - mean) / stdev * aff_w + aff_b
    # dropout -> identity (eval)
    y = jnp.einsum("blc,pc->blp", xn, lin_w) + lin_b        # Linear over last dim
    out = ((y - aff_b) / (aff_w + EPS * EPS)) * stdev + mean
    return out


if __name__ == "__main__":
    # seq_len == pred_len == channel == 16 (required by the reference code's shapes)
    seq_len = pred_len = channel = 16

    key = jax.random.PRNGKey(0)
    kx1, kx2, kw, kb = jax.random.split(key, 4)

    # Deterministic parameter init (synthetic; matches nn.Linear / RevIN shapes)
    lin_w = jax.random.uniform(kw, (pred_len, seq_len), dtype=jnp.float32,
                               minval=-0.25, maxval=0.25)
    lin_b = jax.random.uniform(kb, (pred_len,), dtype=jnp.float32,
                               minval=-0.25, maxval=0.25)
    aff_w = jnp.ones((channel,), dtype=jnp.float32)   # RevIN affine_weight init
    aff_b = jnp.zeros((channel,), dtype=jnp.float32)  # RevIN affine_bias init

    # Case 1: tiny batch -> single grid step (block == full array dims).
    x1 = jax.random.normal(kx1, (2, seq_len, channel), dtype=jnp.float32)
    out1 = jax.block_until_ready(rlinear_forward(x1, lin_w, lin_b, aff_w, aff_b))
    ref1 = rlinear_reference(x1, lin_w, lin_b, aff_w, aff_b)
    assert out1.shape == (2, seq_len, pred_len)
    assert out1.dtype == x1.dtype
    assert jnp.allclose(out1, ref1, atol=1e-4, rtol=1e-4), "mismatch (B=2) vs reference"

    # Case 2: batch not a multiple of the tile -> exercises the no-pad ragged tail
    # (partial block) and the >=2-step megacore split.
    x2 = jax.random.normal(kx2, (20, seq_len, channel), dtype=jnp.float32)
    out2 = jax.block_until_ready(rlinear_forward(x2, lin_w, lin_b, aff_w, aff_b))
    ref2 = rlinear_reference(x2, lin_w, lin_b, aff_w, aff_b)
    assert out2.shape == (20, seq_len, pred_len)
    assert jnp.allclose(out2, ref2, atol=1e-4, rtol=1e-4), "mismatch (B=20) vs reference"

    print("KERNEL_OK")
</pallas_src>

<mosaic_0001>
module attributes {stable_mosaic.version = 11 : i64} {
  func.func @_rlinear_kernel(%arg0: i32, %arg1: memref<2x256xf32, #tpu.memory_space<vmem>>, %arg2: memref<256x256xf32, #tpu.memory_space<vmem>>, %arg3: memref<1x256xf32, #tpu.memory_space<vmem>>, %arg4: memref<1x256xf32, #tpu.memory_space<vmem>>, %arg5: memref<256x16xf32, #tpu.memory_space<vmem>>, %arg6: memref<16x256xf32, #tpu.memory_space<vmem>>, %arg7: memref<16x256xf32, #tpu.memory_space<vmem>>, %arg8: memref<16x256xf32, #tpu.memory_space<vmem>>, %arg9: memref<2x256xf32, #tpu.memory_space<vmem>>) attributes {dimension_semantics = [#tpu.dimension_semantics<parallel>], iteration_bounds = array<i64: 1>, scalar_prefetch = 0 : i64, scratch_operands = 0 : i64, tpu.core_type = #tpu.core_type<tc>, window_params = [{transform_indices = @transform_0, window_bounds = array<i64: 2, 256>}, {pipeline_mode = #tpu.pipeline_mode<synchronous>, transform_indices = @transform_1, window_bounds = array<i64: 256, 256>}, {pipeline_mode = #tpu.pipeline_mode<synchronous>, transform_indices = @transform_2, window_bounds = array<i64: 1, 256>}, {pipeline_mode = #tpu.pipeline_mode<synchronous>, transform_indices = @transform_3, window_bounds = array<i64: 1, 256>}, {pipeline_mode = #tpu.pipeline_mode<synchronous>, transform_indices = @transform_4, window_bounds = array<i64: 256, 16>}, {pipeline_mode = #tpu.pipeline_mode<synchronous>, transform_indices = @transform_5, window_bounds = array<i64: 16, 256>}, {pipeline_mode = #tpu.pipeline_mode<synchronous>, transform_indices = @transform_6, window_bounds = array<i64: 16, 256>}, {pipeline_mode = #tpu.pipeline_mode<synchronous>, transform_indices = @transform_7, window_bounds = array<i64: 16, 256>}, {transform_indices = @transform_8, window_bounds = array<i64: 2, 256>}]} {
    %c0 = arith.constant 0 : index
    %c0_0 = arith.constant 0 : index
    %0 = vector.load %arg1[%c0, %c0_0] : memref<2x256xf32, #tpu.memory_space<vmem>>, vector<2x256xf32>
    %c0_1 = arith.constant 0 : index
    %c0_2 = arith.constant 0 : index
    %1 = vector.load %arg5[%c0_1, %c0_2] : memref<256x16xf32, #tpu.memory_space<vmem>>, vector<256x16xf32>
    %cst = arith.constant dense<0.000000e+00> : vector<2x16xf32>
    %2 = tpu.matmul %0, %1, %cst {dimension_numbers = #tpu.dot_dimension_numbers<[1], [0], [0], [1], [0, 0, 1, 1], [], []>} : vector<2x256xf32>, vector<256x16xf32>, vector<2x16xf32> -> vector<2x16xf32>
    %c0_3 = arith.constant 0 : index
    %c0_4 = arith.constant 0 : index
    %3 = vector.load %arg6[%c0_3, %c0_4] : memref<16x256xf32, #tpu.memory_space<vmem>>, vector<16x256xf32>
    %cst_5 = arith.constant dense<0.000000e+00> : vector<2x256xf32>
    %4 = tpu.matmul %2, %3, %cst_5 {dimension_numbers = #tpu.dot_dimension_numbers<[1], [0], [0], [1], [0, 0, 1, 1], [], []>} : vector<2x16xf32>, vector<16x256xf32>, vector<2x256xf32> -> vector<2x256xf32>
    %5 = arith.subf %0, %4 : vector<2x256xf32>
    %6 = arith.mulf %5, %5 : vector<2x256xf32>
    %cst_6 = arith.constant dense<0.000000e+00> : vector<2x16xf32>
    %7 = tpu.matmul %6, %1, %cst_6 {dimension_numbers = #tpu.dot_dimension_numbers<[1], [0], [0], [1], [0, 0, 1, 1], [], []>} : vector<2x256xf32>, vector<256x16xf32>, vector<2x16xf32> -> vector<2x16xf32>
    %cst_7 = arith.constant 9.99999974E-6 : f32
    %8 = vector.broadcast %cst_7 : f32 to vector<2x16xf32>
    %9 = arith.addf %7, %8 : vector<2x16xf32>
    %10 = math.sqrt %9 : vector<2x16xf32>
    %11 = math.rsqrt %9 : vector<2x16xf32>
    %c0_8 = arith.constant 0 : index
    %c0_9 = arith.constant 0 : index
    %12 = vector.load %arg7[%c0_8, %c0_9] : memref<16x256xf32, #tpu.memory_space<vmem>>, vector<16x256xf32>
    %cst_10 = arith.constant dense<0.000000e+00> : vector<2x256xf32>
    %13 = tpu.matmul %11, %12, %cst_10 {dimension_numbers = #tpu.dot_dimension_numbers<[1], [0], [0], [1], [0, 0, 1, 1], [], []>} : vector<2x16xf32>, vector<16x256xf32>, vector<2x256xf32> -> vector<2x256xf32>
    %c0_11 = arith.constant 0 : index
    %c0_12 = arith.constant 0 : index
    %14 = vector.load %arg8[%c0_11, %c0_12] : memref<16x256xf32, #tpu.memory_space<vmem>>, vector<16x256xf32>
    %cst_13 = arith.constant dense<0.000000e+00> : vector<2x256xf32>
    %15 = tpu.matmul %10, %14, %cst_13 {dimension_numbers = #tpu.dot_dimension_numbers<[1], [0], [0], [1], [0, 0, 1, 1], [], []>} : vector<2x16xf32>, vector<16x256xf32>, vector<2x256xf32> -> vector<2x256xf32>
    %c0_14 = arith.constant 0 : index
    %c0_15 = arith.constant 0 : index
    %16 = vector.load %arg4[%c0_14, %c0_15] : memref<1x256xf32, #tpu.memory_space<vmem>>, vector<1x256xf32>
    %17 = arith.mulf %5, %13 : vector<2x256xf32>
    %18 = vector.broadcast %16 : vector<1x256xf32> to vector<2x256xf32>
    %19 = arith.addf %17, %18 : vector<2x256xf32>
    %c0_16 = arith.constant 0 : index
    %c0_17 = arith.constant 0 : index
    %20 = vector.load %arg2[%c0_16, %c0_17] : memref<256x256xf32, #tpu.memory_space<vmem>>, vector<256x256xf32>
    %cst_18 = arith.constant dense<0.000000e+00> : vector<2x256xf32>
    %21 = tpu.matmul %19, %20, %cst_18 {dimension_numbers = #tpu.dot_dimension_numbers<[1], [0], [0], [1], [0, 0, 1, 1], [], []>} : vector<2x256xf32>, vector<256x256xf32>, vector<2x256xf32> -> vector<2x256xf32>
    %c0_19 = arith.constant 0 : index
    %c0_20 = arith.constant 0 : index
    %22 = vector.load %arg3[%c0_19, %c0_20] : memref<1x256xf32, #tpu.memory_space<vmem>>, vector<1x256xf32>
    %23 = vector.broadcast %22 : vector<1x256xf32> to vector<2x256xf32>
    %24 = arith.addf %21, %23 : vector<2x256xf32>
    %25 = vector.broadcast %16 : vector<1x256xf32> to vector<2x256xf32>
    %26 = arith.subf %24, %25 : vector<2x256xf32>
    %27 = arith.mulf %26, %15 : vector<2x256xf32>
    %28 = arith.addf %27, %4 : vector<2x256xf32>
    %c0_21 = arith.constant 0 : index
    %c0_22 = arith.constant 0 : index
    %29 = vector.load %arg9[%c0_21, %c0_22] : memref<2x256xf32, #tpu.memory_space<vmem>>, vector<2x256xf32>
    tpu.vector_store %arg9[%c0_21, %c0_22], %28 {strides = array<i32>} : memref<2x256xf32, #tpu.memory_space<vmem>>, vector<2x256xf32>,
    return
  }
  func.func @transform_0(%arg0: i32) -> (i32, i32) {
    %c0_i32 = arith.constant 0 : i32
    %c0_i32_0 = arith.constant 0 : i32
    return %arg0, %c0_i32 : i32, i32
  }
  func.func @transform_1(%arg0: i32) -> (i32, i32) {
    %c0_i32 = arith.constant 0 : i32
    %c0_i32_0 = arith.constant 0 : i32
    %c0_i32_1 = arith.constant 0 : i32
    return %c0_i32, %c0_i32_0 : i32, i32
  }
  func.func @transform_2(%arg0: i32) -> (i32, i32) {
    %c0_i32 = arith.constant 0 : i32
    %c0_i32_0 = arith.constant 0 : i32
    %c0_i32_1 = arith.constant 0 : i32
    return %c0_i32, %c0_i32_0 : i32, i32
  }
  func.func @transform_3(%arg0: i32) -> (i32, i32) {
    %c0_i32 = arith.constant 0 : i32
    %c0_i32_0 = arith.constant 0 : i32
    %c0_i32_1 = arith.constant 0 : i32
    return %c0_i32, %c0_i32_0 : i32, i32
  }
  func.func @transform_4(%arg0: i32) -> (i32, i32) {
    %c0_i32 = arith.constant 0 : i32
    %c0_i32_0 = arith.constant 0 : i32
    %c0_i32_1 = arith.constant 0 : i32
    return %c0_i32, %c0_i32_0 : i32, i32
  }
  func.func @transform_5(%arg0: i32) -> (i32, i32) {
    %c0_i32 = arith.constant 0 : i32
    %c0_i32_0 = arith.constant 0 : i32
    %c0_i32_1 = arith.constant 0 : i32
    return %c0_i32, %c0_i32_0 : i32, i32
  }
  func.func @transform_6(%arg0: i32) -> (i32, i32) {
    %c0_i32 = arith.constant 0 : i32
    %c0_i32_0 = arith.constant 0 : i32
    %c0_i32_1 = arith.constant 0 : i32
    return %c0_i32, %c0_i32_0 : i32, i32
  }
  func.func @transform_7(%arg0: i32) -> (i32, i32) {
    %c0_i32 = arith.constant 0 : i32
    %c0_i32_0 = arith.constant 0 : i32
    %c0_i32_1 = arith.constant 0 : i32
    return %c0_i32, %c0_i32_0 : i32, i32
  }
  func.func @transform_8(%arg0: i32) -> (i32, i32) {
    %c0_i32 = arith.constant 0 : i32
    %c0_i32_0 = arith.constant 0 : i32
    return %arg0, %c0_i32 : i32, i32
  }
}

</mosaic_0001>

<bundles_post_ra>
// kernel: tpu_custom_call.1
= control target key start
LH: loop header
LB: loop body
LE: loop exit
PB: predicated region body
PF: predicated region fallthrough
CT: control target
= control target key end

     0   :  { %13 = vsyncpa [#allocation3], 0  ;;  %s895_s0 = inlined_call_operand.vmem [shape: f32[2,256], index: 0, kind: input, shape index: {}]   ;;  %s896_s1 = inlined_call_operand.hbm [shape: f32[256,256], index: 1, kind: input, shape index: {}]   ;;  %s897_s2 = inlined_call_operand.vmem [shape: f32[1,256], index: 2, kind: input, shape index: {}]   ;;  %s898_s3 = inlined_call_operand.vmem [shape: f32[1,256], index: 3, kind: input, shape index: {}]   ;;  %s899_s4 = inlined_call_operand.vmem [shape: f32[256,16], index: 4, kind: input, shape index: {}]   ;;  %s900_s5 = inlined_call_operand.vmem [shape: f32[16,256], index: 5, kind: input, shape index: {}]   ;;  %s901_s6 = inlined_call_operand.vmem [shape: f32[16,256], index: 6, kind: input, shape index: {}]   ;;  %s902_s7 = inlined_call_operand.vmem [shape: f32[16,256], index: 7, kind: input, shape index: {}]   ;;  %s903_s8 = inlined_call_operand.hbm [shape: f32[2,256], index: 8, kind: output, shape index: {}]  }
   0x1   :  { %14 = vsyncpa [#allocation4], 0  ;;  %s21_s29 = sshll.u32 %s896_s1, 4  ;;  %s608_s30 = smov [#allocation2]   ;;  %s22_s29 = int_to_ptr.hbm [resolvable:$true] %s21_s29 }
   0x2   :  { %s23_s9 = sshll.u32 %s608_s30, 4  ;;  %s609_s10 = smov 256   ;;  %s24_s9 = int_to_ptr.vmem [resolvable:$true] %s23_s9 }
   0x3   :  { %s610_s11 = smov 16  }
   0x4   :  { %29 = dma.hbm_to_vmem [thread:$0]  %s22_s29, 8192, %s24_s9, [#allocation3], %s609_s10, %s609_s10, %s610_s11  }
   0x5   :  { %604 = dma.done.wait [#allocation3], 8192  }
   0x6   :  { %605 = vsyncadd [#allocation3], 4294959104  ;;  %v663_v0 = vld [vmem:[%s899_s4 + $0x78] sm:$0xff]  ;;  %v673_v2 = vld [vmem:[%s899_s4 + $0x70] sm:$0xff]  ;;  %vm129_vm0 = vcmask 130048   ;;  %vm176_vm1 = vcmask 1041408  }
   0x7   :  { %v668_v1 = vld [vmem:[%s899_s4 + $0xf8] sm:$0xff]  ;;  %85 = vmatpush.msra.mxu0 %v663_v0  ;;  %v680_v3 = vld [vmem:[%s899_s4 + $0xf0] sm:$0xff]  ;;  %v685_v4 = vld [vmem:[%s899_s4 + $0x68] sm:$0xff]  ;;  %s611_s28 = smov [#allocation5]   ;;  %s534_s9 = sshll.u32 %s903_s8, 4  ;;  %s535_s9 = int_to_ptr.hbm [resolvable:$true] %s534_s9 }
   0x8   :  { %105 = vmatpush.msra.mxu1 %v668_v1  ;;  %v690_v5 = vld [vmem:[%s899_s4 + $0xe8] sm:$0xff]  ;;  %v697_v6 = vld [vmem:[%s899_s4 + $0x60] sm:$0xff]  ;;  %v709_v8 = vld [vmem:[%s899_s4 + $0x58] sm:$0xff] }
   0x9   :  { %86 = vmatpush.msra.mxu0 %v673_v2  ;;  %v702_v7 = vld [vmem:[%s899_s4 + $0xe0] sm:$0xff]  ;;  %v714_v9 = vld [vmem:[%s899_s4 + $0xd8] sm:$0xff]  ;;  %v721_v10 = vld [vmem:[%s899_s4 + $0x50] sm:$0xff] }
   0xa   :  { %106 = vmatpush.msra.mxu1 %v680_v3  ;;  %v726_v11 = vld [vmem:[%s899_s4 + $0xd0] sm:$0xff]  ;;  %v733_v12 = vld [vmem:[%s899_s4 + $0x48] sm:$0xff]  ;;  %v743_v14 = vld [vmem:[%s895_s0] sm:$0xf] }
   0xb   :  { %87 = vmatpush.msra.mxu0 %v685_v4  ;;  %v738_v13 = vld [vmem:[%s899_s4 + $0xc8] sm:$0xff]  ;;  %80 = vst [vmem:[#allocation1] ss:$4 sm:$0xff] %v743_v14  ;;  %v751_v15 = vld [vmem:[%s899_s4 + $0x40] sm:$0xff]  ;;  %v54_v17 = vld [vmem:[%s899_s4 + $0x38] sm:$0xff] }
   0xc   :  { %107 = vmatpush.msra.mxu1 %v690_v5  ;;  %v756_v16 = vld [vmem:[%s899_s4 + $0xc0] sm:$0xff]  ;;  %v70_v18 = vld [vmem:[%s899_s4 + $0xb8] sm:$0xff]  ;;  %v53_v19 = vld [vmem:[%s899_s4 + $0x30] sm:$0xff] }
   0xd   :  { %88 = vmatpush.msra.mxu0 %v697_v6  ;;  %v69_v20 = vld [vmem:[%s899_s4 + $0xb0] sm:$0xff]  ;;  %v52_v21 = vld [vmem:[%s899_s4 + $0x28] sm:$0xff]  ;;  %v51_v23 = vld [vmem:[%s899_s4 + $0x20] sm:$0xff] }
   0xe   :  { %108 = vmatpush.msra.mxu1 %v702_v7  ;;  %v68_v22 = vld [vmem:[%s899_s4 + $0xa8] sm:$0xff]  ;;  %v67_v24 = vld [vmem:[%s899_s4 + $0xa0] sm:$0xff]  ;;  %v50_v25 = vld [vmem:[%s899_s4 + $0x18] sm:$0xff] }
   0xf   :  { %89 = vmatpush.msra.mxu0 %v709_v8  ;;  %v66_v26 = vld [vmem:[%s899_s4 + $0x98] sm:$0xff]  ;;  %v49_v27 = vld [vmem:[%s899_s4 + $0x10] sm:$0xff]  ;;  %v48_v29 = vld [vmem:[%s899_s4 + $0x8] sm:$0xff] }
  0x10   :  { %109 = vmatpush.msra.mxu1 %v714_v9  ;;  %v65_v28 = vld [vmem:[%s899_s4 + $0x90] sm:$0xff]  ;;  %v64_v30 = vld [vmem:[%s899_s4 + $0x88] sm:$0xff]  ;;  %v47_v31 = vld [vmem:[%s899_s4] sm:$0xff] }
  0x11   :  { %90 = vmatpush.msra.mxu0 %v721_v10  ;;  %v63_v32 = vld [vmem:[%s899_s4 + $0x80] sm:$0xff]  ;;  %v127_v35 = vld [vmem:[%s900_s5 + $0x10] sm:$0xff]  ;;  %v128_v36 = vld [vmem:[%s900_s5 + $0x18] sm:$0xff] }
  0x12   :  { %110 = vmatpush.msra.mxu1 %v726_v11  ;;  %v81_v33 = vld.sshfl [vmem:[#allocation1] sm:$0xff pattern:$0x73625140]  ;;  %v82_v34 = vld.sshfl [vmem:[#allocation1 + $0x8] sm:$0xff pattern:$0x73625140]  ;;  %147 = vmatpush.msra.mxu2 %v127_v35 }
  0x13   :  { %91 = vmatpush.msra.mxu0 %v733_v12  ;;  %167 = vmatpush.msra.mxu3 %v128_v36  ;;  %v125_v37 = vld [vmem:[%s900_s5] sm:$0xff]  ;;  %v126_v38 = vld [vmem:[%s900_s5 + $0x8] sm:$0xff]  ;;  %v252_v50 = vld [vmem:[%s901_s6 + $0x18] sm:$0xff] }
  0x14   :  { %111 = vmatpush.msra.mxu1 %v738_v13  ;;  %148 = vmatpush.msra.mxu2 %v125_v37  ;;  %v251_v51 = vld [vmem:[%s901_s6 + $0x10] sm:$0xff]  ;;  %v250_v52 = vld [vmem:[%s901_s6 + $0x8] sm:$0xff]  ;;  %v249_v53 = vld [vmem:[%s901_s6] sm:$0xff] }
  0x15   :  { %92 = vmatpush.msra.mxu0 %v751_v15  ;;  %168 = vmatpush.msra.mxu3 %v126_v38  ;;  %v298_v54 = vld [vmem:[%s902_s7 + $0x10] sm:$0xff]  ;;  %v299_v55 = vld [vmem:[%s902_s7 + $0x18] sm:$0xff]  ;;  %v296_v56 = vld [vmem:[%s902_s7] sm:$0xff] }
  0x16   :  { %112 = vmatpush.msra.mxu1 %v756_v16  ;;  %187 = vmatpush.msrb.mxu2 %v663_v0  ;;  %v297_v57 = vld [vmem:[%s902_s7 + $0x8] sm:$0xff]  ;;  %v389_v58 = vld [vmem:[#allocation2 + $0xf0] sm:$0xff]  ;;  %v390_v60 = vld [vmem:[#allocation2 + $0xf8] sm:$0xff] }
  0x17   :  { %93 = vmatpush.msra.mxu0 %v54_v17  ;;  %207 = vmatpush.msrb.mxu3 %v668_v1  ;;  %v421_v59 = vld [vmem:[#allocation2 + $0x1f0] sm:$0xff]  ;;  %v422_v61 = vld [vmem:[#allocation2 + $0x1f8] sm:$0xff]  ;;  %v387_v62 = vld [vmem:[#allocation2 + $0xe0] sm:$0xff] }
  0x18   :  { %113 = vmatpush.msra.mxu1 %v70_v18  ;;  %188 = vmatpush.msrb.mxu2 %v673_v2  ;;  %v419_v63 = vld [vmem:[#allocation2 + $0x1e0] sm:$0xff]  ;;  %v388_v0 = vld [vmem:[#allocation2 + $0xe8] sm:$0xff]  ;;  %v385_v2 = vld [vmem:[#allocation2 + $0xd0] sm:$0xff] }
  0x19   :  { %94 = vmatpush.msra.mxu0 %v53_v19  ;;  %208 = vmatpush.msrb.mxu3 %v680_v3  ;;  %v420_v1 = vld [vmem:[#allocation2 + $0x1e8] sm:$0xff]  ;;  %v417_v3 = vld [vmem:[#allocation2 + $0x1d0] sm:$0xff] }
  0x1a   :  { %114 = vmatpush.msra.mxu1 %v69_v20  ;;  %189 = vmatpush.msrb.mxu2 %v685_v4  ;;  %v386_v4 = vld [vmem:[#allocation2 + $0xd8] sm:$0xff] }
  0x1b   :  { %95 = vmatpush.msra.mxu0 %v52_v21  ;;  %209 = vmatpush.msrb.mxu3 %v690_v5  ;;  %v418_v5 = vld [vmem:[#allocation2 + $0x1d8] sm:$0xff] }
  0x1c   :  { %115 = vmatpush.msra.mxu1 %v68_v22  ;;  %190 = vmatpush.msrb.mxu2 %v697_v6  ;;  %v383_v6 = vld [vmem:[#allocation2 + $0xc0] sm:$0xff] }
  0x1d   :  { %96 = vmatpush.msra.mxu0 %v51_v23  ;;  %210 = vmatpush.msrb.mxu3 %v702_v7  ;;  %v415_v7 = vld [vmem:[#allocation2 + $0x1c0] sm:$0xff] }
  0x1e   :  { %116 = vmatpush.msra.mxu1 %v67_v24  ;;  %191 = vmatpush.msrb.mxu2 %v709_v8  ;;  %v384_v8 = vld [vmem:[#allocation2 + $0xc8] sm:$0xff] }
  0x1f   :  { %97 = vmatpush.msra.mxu0 %v50_v25  ;;  %211 = vmatpush.msrb.mxu3 %v714_v9  ;;  %v416_v9 = vld [vmem:[#allocation2 + $0x1c8] sm:$0xff] }
  0x20   :  { %117 = vmatpush.msra.mxu1 %v66_v26  ;;  %192 = vmatpush.msrb.mxu2 %v721_v10 }
  0x21   :  { %98 = vmatpush.msra.mxu0 %v49_v27  ;;  %212 = vmatpush.msrb.mxu3 %v726_v11  ;;  %v381_v11 = vld [vmem:[#allocation2 + $0xb0] sm:$0xff] }
  0x22   :  { %118 = vmatpush.msra.mxu1 %v65_v28  ;;  %193 = vmatpush.msrb.mxu2 %v733_v12  ;;  %v413_v12 = vld [vmem:[#allocation2 + $0x1b0] sm:$0xff] }
  0x23   :  { %99 = vmatpush.msra.mxu0 %v48_v29  ;;  %213 = vmatpush.msrb.mxu3 %v738_v13 }
  0x24   :  { %119 = vmatpush.msra.mxu1 %v64_v30  ;;  %194 = vmatpush.msrb.mxu2 %v751_v15  ;;  %v414_v15 = vld [vmem:[#allocation2 + $0x1b8] sm:$0xff] }
  0x25   :  { %100 = vmatpush.msra.mxu0 %v47_v31  ;;  %214 = vmatpush.msrb.mxu3 %v756_v16 }
  0x26   :  { %120 = vmatpush.msra.mxu1 %v63_v32  ;;  %101 = vmatmul.f32.vlgmr.msra.gmra.mxu0 %v81_v33 }
  0x27   :  { %121 = vmatmul.f32.vlgmr.msra.gmra.mxu1 %v82_v34  ;;  %195 = vmatpush.msrb.mxu2 %v54_v17  ;;  %v379_v17 = vld [vmem:[#allocation2 + $0xa0] sm:$0xff] }
  0x28   :  { %215 = vmatpush.msrb.mxu3 %v70_v18  ;;  %290 = vmatpush.msrb.mxu1 %v252_v50  ;;  %v411_v18 = vld [vmem:[#allocation2 + $0x1a0] sm:$0xff]  ;;  %v372_v50 = vld [vmem:[#allocation2 + $0x68] sm:$0xff] }
  0x29   :  { %196 = vmatpush.msrb.mxu2 %v53_v19  ;;  %270 = vmatpush.msrb.mxu0 %v251_v51  ;;  %v404_v51 = vld [vmem:[#allocation2 + $0x168] sm:$0xff] }
  0x2a   :  { %216 = vmatpush.msrb.mxu3 %v69_v20  ;;  %291 = vmatpush.msrb.mxu1 %v250_v52  ;;  %v380_v20 = vld [vmem:[#allocation2 + $0xa8] sm:$0xff]  ;;  %v369_v52 = vld [vmem:[#allocation2 + $0x50] sm:$0xff] }
  0x2b   :  { %197 = vmatpush.msrb.mxu2 %v52_v21  ;;  %271 = vmatpush.msrb.mxu0 %v249_v53  ;;  %v412_v21 = vld [vmem:[#allocation2 + $0x1a8] sm:$0xff]  ;;  %v401_v53 = vld [vmem:[#allocation2 + $0x150] sm:$0xff] }
  0x2c   :  { %217 = vmatpush.msrb.mxu3 %v68_v22  ;;  %455 = vmatpush.msra.mxu1 %v421_v59  ;;  %v377_v22 = vld [vmem:[#allocation2 + $0x90] sm:$0xff]  ;;  %v400_v59 = vld [vmem:[#allocation2 + $0x148] sm:$0xff] }
  0x2d   :  { %198 = vmatpush.msrb.mxu2 %v51_v23  ;;  %435 = vmatpush.msra.mxu0 %v389_v58  ;;  %v409_v23 = vld [vmem:[#allocation2 + $0x190] sm:$0xff]  ;;  %v368_v58 = vld [vmem:[#allocation2 + $0x48] sm:$0xff] }
  0x2e   :  { %218 = vmatpush.msrb.mxu3 %v67_v24  ;;  %456 = vmatpush.msra.mxu1 %v419_v63  ;;  %v378_v24 = vld [vmem:[#allocation2 + $0x98] sm:$0xff] }
  0x2f   :  { %199 = vmatpush.msrb.mxu2 %v50_v25  ;;  %436 = vmatpush.msra.mxu0 %v387_v62  ;;  %v410_v25 = vld [vmem:[#allocation2 + $0x198] sm:$0xff] }
  0x30   :  { %219 = vmatpush.msrb.mxu3 %v66_v26  ;;  %457 = vmatpush.msra.mxu1 %v417_v3  ;;  %v375_v26 = vld [vmem:[#allocation2 + $0x80] sm:$0xff]  ;;  %v366_v62 = vld [vmem:[#allocation2 + $0x38] sm:$0xff]  ;;  %v396_v3 = vld [vmem:[#allocation2 + $0x128] sm:$0xff] }
  0x31   :  { %200 = vmatpush.msrb.mxu2 %v49_v27  ;;  %437 = vmatpush.msra.mxu0 %v385_v2  ;;  %v407_v27 = vld [vmem:[#allocation2 + $0x180] sm:$0xff]  ;;  %v398_v63 = vld [vmem:[#allocation2 + $0x138] sm:$0xff]  ;;  %v364_v2 = vld [vmem:[#allocation2 + $0x28] sm:$0xff] }
  0x32   :  { %220 = vmatpush.msrb.mxu3 %v65_v28  ;;  %458 = vmatpush.msra.mxu1 %v415_v7  ;;  %v376_v28 = vld [vmem:[#allocation2 + $0x88] sm:$0xff]  ;;  %v394_v7 = vld [vmem:[#allocation2 + $0x118] sm:$0xff] }
  0x33   :  { %201 = vmatpush.msrb.mxu2 %v48_v29  ;;  %438 = vmatpush.msra.mxu0 %v383_v6  ;;  %v408_v29 = vld [vmem:[#allocation2 + $0x188] sm:$0xff]  ;;  %v362_v6 = vld [vmem:[#allocation2 + $0x18] sm:$0xff] }
  0x34   :  { %221 = vmatpush.msrb.mxu3 %v64_v30  ;;  %459 = vmatpush.msra.mxu1 %v413_v12  ;;  %v343_v12 = vld [vmem:[%s898_s3] sm:$0x3] }
  0x35   :  { %202 = vmatpush.msrb.mxu2 %v47_v31  ;;  %439 = vmatpush.msra.mxu0 %v381_v11  ;;  %v392_v11 = vld [vmem:[#allocation2 + $0x108] sm:$0xff] }
  0x36   :  { %222 = vmatpush.msrb.mxu3 %v63_v32  ;;  %460 = vmatpush.msra.mxu1 %v411_v18 }
  0x37   :  { %440 = vmatpush.msra.mxu0 %v379_v17 }
  0x38   :  { %461 = vmatpush.msra.mxu1 %v409_v23 }
  0x39   :  { %441 = vmatpush.msra.mxu0 %v377_v22 }
  0x3a   :  { %462 = vmatpush.msra.mxu1 %v407_v27 }
  0x3b   :  { %442 = vmatpush.msra.mxu0 %v375_v26 }
  0xa3   :  { %v102_v39 = vpop.f32.mrf.mxu0 }
  0xa4   :  { %v122_v40 = vpop.f32.mrf.mxu1 }
  0xa5   :  { %v123_v41 = vadd.f32 %v122_v40, %v102_v39 }
  0xa7   :  { %544 = vmatmul.msk.f32.vlgmr.msra.gmra.mxu2 %vm129_vm0, %v123_v41  ;;  %545 = vmatmul.msk.f32.vlgmr.msra.gmra.mxu3 %vm129_vm0, %v123_v41  ;;  %v373_v41 = vld [vmem:[#allocation2 + $0x70] sm:$0xff] }
  0xa8   :  { %317 = vmatpush.msra.mxu2 %v298_v54  ;;  %337 = vmatpush.msra.mxu3 %v299_v55  ;;  %v370_v54 = vld [vmem:[#allocation2 + $0x58] sm:$0xff] }
  0xa9   :  { %443 = vmatpush.msra.mxu0 %v373_v41  ;;  %v402_v55 = vld [vmem:[#allocation2 + $0x158] sm:$0xff] }
  0xaa   :  { %318 = vmatpush.msra.mxu2 %v296_v56  ;;  %338 = vmatpush.msra.mxu3 %v297_v57  ;;  %v367_v56 = vld [vmem:[#allocation2 + $0x40] sm:$0xff] }
  0xab   :  { %v399_v57 = vld [vmem:[#allocation2 + $0x140] sm:$0xff] }
 0x12a   :  { %v840_v42 = vpop.f32.mrf.mxu3  ;;  %v843_v44 = vpop.f32.mrf.mxu2 }
 0x12b   :  { %v175_v43 = vrot.slane %v840_v42, 6 }
 0x12d   :  { %v177_v45 = vsel %vm176_vm1, %v843_v44, %v175_v43  ;;  %v405_v43 = vld [vmem:[#allocation2 + $0x170] sm:$0xff] }
 0x12e   :  { %v848_v46 = vsub.f32 %v743_v14, %v177_v45  ;;  %v382_v14 = vld [vmem:[#allocation2 + $0xb8] sm:$0xff]  ;;  %463 = vmatpush.msra.mxu1 %v405_v43 }
 0x12f   :  { %v374_v45 = vld [vmem:[#allocation2 + $0x78] sm:$0xff] }
 0x130   :  { %v180_v47 = vmul.f32 %v848_v46, %v848_v46 }
 0x132   :  { %182 = vst [vmem:[#allocation1] ss:$4 sm:$0xff] %v180_v47  ;;  %v406_v47 = vld [vmem:[#allocation2 + $0x178] sm:$0xff] }
 0x139   :  { %v183_v48 = vld.sshfl [vmem:[#allocation1] sm:$0xff pattern:$0x73625140]  ;;  %v184_v49 = vld.sshfl [vmem:[#allocation1 + $0x8] sm:$0xff pattern:$0x73625140] }
 0x13a   :  { %203 = vmatmul.f32.vlgmr.msrb.gmra.mxu2 %v183_v48  ;;  %223 = vmatmul.f32.vlgmr.msrb.gmra.mxu3 %v184_v49  ;;  %v371_v48 = vld [vmem:[#allocation2 + $0x60] sm:$0xff] }
 0x13b   :  { %475 = vmatpush.msrb.mxu2 %v390_v60  ;;  %495 = vmatpush.msrb.mxu3 %v422_v61  ;;  %v403_v49 = vld [vmem:[#allocation2 + $0x160] sm:$0xff]  ;;  %v365_v60 = vld [vmem:[#allocation2 + $0x30] sm:$0xff] }
 0x13c   :  { %444 = vmatpush.msra.mxu0 %v371_v48  ;;  %464 = vmatpush.msra.mxu1 %v403_v49  ;;  %v397_v61 = vld [vmem:[#allocation2 + $0x130] sm:$0xff] }
 0x13d   :  { %476 = vmatpush.msrb.mxu2 %v388_v0  ;;  %496 = vmatpush.msrb.mxu3 %v420_v1  ;;  %v363_v0 = vld [vmem:[#allocation2 + $0x20] sm:$0xff] }
 0x13e   :  { %445 = vmatpush.msra.mxu0 %v369_v52  ;;  %465 = vmatpush.msra.mxu1 %v401_v53  ;;  %v395_v1 = vld [vmem:[#allocation2 + $0x120] sm:$0xff] }
 0x13f   :  { %477 = vmatpush.msrb.mxu2 %v386_v4  ;;  %497 = vmatpush.msrb.mxu3 %v418_v5  ;;  %v361_v4 = vld [vmem:[#allocation2 + $0x10] sm:$0xff] }
 0x140   :  { %446 = vmatpush.msra.mxu0 %v367_v56  ;;  %466 = vmatpush.msra.mxu1 %v399_v57  ;;  %v393_v5 = vld [vmem:[#allocation2 + $0x110] sm:$0xff] }
 0x141   :  { %478 = vmatpush.msrb.mxu2 %v384_v8  ;;  %498 = vmatpush.msrb.mxu3 %v416_v9  ;;  %v359_v8 = vld [vmem:[#allocation2] sm:$0xff] }
 0x142   :  { %447 = vmatpush.msra.mxu0 %v365_v60  ;;  %467 = vmatpush.msra.mxu1 %v397_v61  ;;  %v391_v9 = vld [vmem:[#allocation2 + $0x100] sm:$0xff] }
 0x143   :  { %479 = vmatpush.msrb.mxu2 %v382_v14  ;;  %499 = vmatpush.msrb.mxu3 %v414_v15  ;;  %v351_v14 = vperm.slane %v343_v12, 0 }
 0x144   :  { %448 = vmatpush.msra.mxu0 %v363_v0  ;;  %468 = vmatpush.msra.mxu1 %v395_v1 }
 0x145   :  { %480 = vmatpush.msrb.mxu2 %v380_v20  ;;  %500 = vmatpush.msrb.mxu3 %v412_v21 }
 0x146   :  { %449 = vmatpush.msra.mxu0 %v361_v4  ;;  %469 = vmatpush.msra.mxu1 %v393_v5 }
 0x147   :  { %481 = vmatpush.msrb.mxu2 %v378_v24  ;;  %501 = vmatpush.msrb.mxu3 %v410_v25  ;;  %v423_v25 = vld [vmem:[%s897_s2] sm:$0x3]  ;;  %s532_s2 = sshll.u32 %s611_s28, 4  ;;  %s533_s2 = int_to_ptr.vmem [resolvable:$true] %s532_s2 }
 0x148   :  { %450 = vmatpush.msra.mxu0 %v359_v8  ;;  %470 = vmatpush.msra.mxu1 %v391_v9  ;;  %v425_v26 = vperm.slane %v423_v25, 0 }
 0x149   :  { %482 = vmatpush.msrb.mxu2 %v376_v28  ;;  %502 = vmatpush.msrb.mxu3 %v408_v29 }
 0x14b   :  { %483 = vmatpush.msrb.mxu2 %v374_v45  ;;  %503 = vmatpush.msrb.mxu3 %v406_v47 }
 0x14d   :  { %484 = vmatpush.msrb.mxu2 %v372_v50  ;;  %504 = vmatpush.msrb.mxu3 %v404_v51 }
 0x14f   :  { %485 = vmatpush.msrb.mxu2 %v370_v54  ;;  %505 = vmatpush.msrb.mxu3 %v402_v55 }
 0x151   :  { %486 = vmatpush.msrb.mxu2 %v368_v58  ;;  %506 = vmatpush.msrb.mxu3 %v400_v59 }
 0x153   :  { %487 = vmatpush.msrb.mxu2 %v366_v62  ;;  %507 = vmatpush.msrb.mxu3 %v398_v63 }
 0x155   :  { %488 = vmatpush.msrb.mxu2 %v364_v2  ;;  %508 = vmatpush.msrb.mxu3 %v396_v3 }
 0x157   :  { %489 = vmatpush.msrb.mxu2 %v362_v6  ;;  %509 = vmatpush.msrb.mxu3 %v394_v7 }
 0x159   :  { %510 = vmatpush.msrb.mxu3 %v392_v11 }
 0x1bd   :  { %v204_v10 = vpop.f32.mrf.mxu2  ;;  %v224_v16 = vpop.f32.mrf.mxu3 }
 0x1be   :  { %v205_v13 = vadd.f32 1e-05, %v204_v10  ;;  %v360_v10 = vld [vmem:[#allocation2 + $0x8] sm:$0xff] }
 0x1bf   :  { %490 = vmatpush.msrb.mxu2 %v360_v10 }
 0x1c0   :  { %v225_v19 = vadd.f32 %v224_v16, %v205_v13  ;;  %v352_v13 = vperm.slane %v343_v12, 1 }
 0x1c2   :  { %554 = vrsqrt.f32 %v225_v19  ;;  %vm245_vm3 = vweird.f32 %v225_v19  ;;  %vm234_vm5 = vcmp.eq.f32.partialorder %v225_v19, inf  ;;  %v237_v38 = vand.u32 2147483648, %v225_v19 }
 0x1c3   :  { %vm236_vm6 = vcmp.eq.f32.partialorder %v225_v19, 0.0  ;;  %v355_v15 = vrot.slane %v352_v13, 6 }
 0x1c5   :  { %v356_v20 = vsel %vm176_vm1, %v351_v14, %v355_v15 }
 0x1c8   :  { %v555_v30 = vpop.eup %554 }
 0x1c9   :  { %v228_v31 = vmul.f32 %v555_v30, %v225_v19  ;;  %vm246_vm2 = vweird.f32 %v555_v30 }
 0x1ca   :  { %vm247_vm4 = vmor %vm245_vm3, %vm246_vm2 }
 0x1cb   :  { %v229_v32 = vmul.f32 %v555_v30, %v228_v31  ;;  %v426_v31 = vperm.slane %v423_v25, 1 }
 0x1cd   :  { %v230_v33 = vmul.f32 0.5, %v229_v32 }
 0x1cf   :  { %v231_v34 = vsub.f32 1.5, %v230_v33 }
 0x1d1   :  { %v232_v35 = vmul.f32 %v555_v30, %v231_v34 }
 0x1d3   :  { %v233_v36 = vmul.f32 %v232_v35, %v225_v19  ;;  %v248_v37 = vsel %vm247_vm4, %v555_v30, %v232_v35 }
 0x1d4   :  { %546 = vmatmul.msk.f32.vlgmr.msrb.gmra.mxu0 %vm129_vm0, %v248_v37  ;;  %547 = vmatmul.msk.f32.vlgmr.msrb.gmra.mxu1 %vm129_vm0, %v248_v37 }
 0x1d5   :  { %v235_v39 = vsel %vm234_vm5, %v225_v19, %v233_v36 }
 0x1d6   :  { %v238_v40 = vsel %vm236_vm6, %v237_v38, %v235_v39 }
 0x1d7   :  { %548 = vmatmul.msk.f32.vlgmr.msra.gmra.mxu2 %vm129_vm0, %v238_v40  ;;  %549 = vmatmul.msk.f32.vlgmr.msra.gmra.mxu3 %vm129_vm0, %v238_v40 }
 0x251   :  { %v293_v16 = vpop.f32.mrf.mxu1  ;;  %v273_v18 = vpop.f32.mrf.mxu0 }
 0x252   :  { %v346_v17 = vrot.slane %v293_v16, 6 }
 0x254   :  { %v347_v19 = vsel %vm176_vm1, %v273_v18, %v346_v17 }
 0x255   :  { %v349_v21 = vmul.f32 %v347_v19, %v848_v46 }
 0x257   :  { %v358_v22 = vadd.f32 %v356_v20, %v349_v21 }
 0x259   :  { %430 = vst [vmem:[#allocation1] ss:$4 sm:$0xff] %v358_v22 }
 0x25a   :  { %v320_v27 = vpop.f32.mrf.mxu2  ;;  %v340_v29 = vpop.f32.mrf.mxu3 }
 0x260   :  { %v431_v23 = vld.sshfl [vmem:[#allocation1] sm:$0xff pattern:$0x73625140]  ;;  %v432_v24 = vld.sshfl [vmem:[#allocation1 + $0x8] sm:$0xff pattern:$0x73625140] }
 0x261   :  { %451 = vmatmul.f32.vlgmr.msra.gmra.mxu0 %v431_v23  ;;  %471 = vmatmul.f32.vlgmr.msra.gmra.mxu1 %v432_v24 }
 0x262   :  { %491 = vmatmul.f32.vlgmr.msrb.gmra.mxu2 %v431_v23  ;;  %511 = vmatmul.f32.vlgmr.msrb.gmra.mxu3 %v432_v24 }
 0x2de   :  { %v452_v28 = vpop.f32.mrf.mxu0  ;;  %v472_v32 = vpop.f32.mrf.mxu1 }
 0x2df   :  { %v453_v30 = vadd.f32 %v452_v28, %v425_v26 }
 0x2e1   :  { %v473_v46 = vadd.f32 %v472_v32, %v453_v30 }
 0x2e3   :  { %v515_v36 = vsub.f32 %v473_v46, %v351_v14 }
 0x2e5   :  { %v492_v33 = vpop.f32.mrf.mxu2  ;;  %v512_v35 = vpop.f32.mrf.mxu3  ;;  %v517_v39 = vmul.f32 %v515_v36, %v320_v27 }
 0x2e6   :  { %v493_v34 = vadd.f32 %v492_v33, %v426_v31 }
 0x2e7   :  { %v519_v43 = vadd.f32 %v517_v39, %v843_v44 }
 0x2e8   :  { %v513_v37 = vadd.f32 %v512_v35, %v493_v34 }
 0x2ea   :  { %v516_v38 = vsub.f32 %v513_v37, %v352_v13 }
 0x2ec   :  { %v518_v40 = vmul.f32 %v516_v38, %v340_v29 }
 0x2ee   :  { %v520_v41 = vadd.f32 %v518_v40, %v840_v42 }
 0x2f0   :  { %v523_v45 = vrot.slane %v520_v41, 6 }
 0x2f2   :  { %v524_v47 = vsel %vm176_vm1, %v519_v43, %v523_v45 }
 0x2f3   :  { %526 = vst [vmem:[#allocation5] sm:$0xf] %v524_v47 }
 0x2f4   :  { %537 = dma.vmem_to_hbm [thread:$0]  %s533_s2, 64, %s535_s9, [#allocation4]  }
 0x2f5   :  { %606 = dma.done.wait [#allocation4], 64  }
 0x2f6   :  { %607 = vsyncadd [#allocation4], 4294967232 }
 0x2f7   :  { %542 = vsyncpa [#allocation3], 1 }
 0x2f8   :  { %543 = vsyncpa [#allocation4], 1 }

</bundles_post_ra>
